<compile_context>
chip_gen: v6e
topology: v6e:2x2x1
jax: 0.10.0
libtpu: 0.0.40
codegen_flags: <defaults>
</compile_context>

<pallas_src>
import functools

import jax
import jax.numpy as jnp
from jax import lax
from jax.experimental import pallas as pl
from jax.experimental.pallas import tpu as pltpu


_CP = pltpu.CompilerParams(
    dimension_semantics=("parallel",),
    vmem_limit_bytes=48 * 1024 * 1024,
)


# ----------------------------- spec / tiling helpers -------------------------

def _batch_spec(n, c):
    """One (n, c) slab per grid step along the batch axis of a (B, n, c) array."""
    return pl.BlockSpec((None, n, c), lambda b: (b, 0, 0))


def _full_spec(a):
    """Whole array resident every grid step (weights / biases)."""
    idx = (0,) * a.ndim
    return pl.BlockSpec(a.shape, lambda *_: idx)


def _row_tile(m, target=256):
    """Largest row tile (multiple of 8, <= target) dividing m; fallback to full m."""
    for t in (target, 128, 64, 32, 16, 8):
        if t <= m and m % t == 0:
            return t
    return m


# ----------------------------- in-kernel helpers -----------------------------

def _bf16(x):
    return x.astype(jnp.bfloat16)


def _ln(x, g, b, eps=1e-5):
    mu = jnp.mean(x, axis=-1, keepdims=True)
    var = jnp.mean(jnp.square(x - mu), axis=-1, keepdims=True)
    return (x - mu) * lax.rsqrt(var + eps) * g + b


# ----------------------------- fused FF kernels (row-tiled) -------------------

def _ff_core(x, g, b, w1, b1, w2, b2):
    h = _ln(x, g, b)
    h = jnp.dot(_bf16(h), w1, preferred_element_type=jnp.float32) + b1
    h = h * jax.nn.sigmoid(h)                          # SiLU / Swish
    h = jnp.dot(_bf16(h), w2, preferred_element_type=jnp.float32) + b2
    return x + 0.5 * h                                 # fused 0.5*scale + residual


def _ff_kernel(x_ref, g_ref, b_ref, w1_ref, b1_ref, w2_ref, b2_ref, o_ref):
    x = x_ref[...].astype(jnp.float32)
    y = _ff_core(x, g_ref[...], b_ref[...], w1_ref[...], b1_ref[...],
                 w2_ref[...], b2_ref[...])
    o_ref[...] = y.astype(o_ref.dtype)


def _ff_postln_kernel(x_ref, g_ref, b_ref, w1_ref, b1_ref, w2_ref, b2_ref,
                      pg_ref, pb_ref, o_ref):
    x = x_ref[...].astype(jnp.float32)
    y = _ff_core(x, g_ref[...], b_ref[...], w1_ref[...], b1_ref[...],
                 w2_ref[...], b2_ref[...])
    y = _ln(y, pg_ref[...], pb_ref[...])               # fused post-LayerNorm
    o_ref[...] = y.astype(o_ref.dtype)


def ff_block(x, ln_g, ln_b, w1, b1, w2, b2, post_g=None, post_b=None):
    B, N, C = x.shape
    M = B * N
    tm = _row_tile(M)
    xf = x.reshape(M, C)
    args = [xf, ln_g.reshape(1, C), ln_b.reshape(1, C),
            w1, b1.reshape(1, -1), w2, b2.reshape(1, C)]
    kern = _ff_kernel
    if post_g is not None:
        args += [post_g.reshape(1, C), post_b.reshape(1, C)]
        kern = _ff_postln_kernel
    in_specs = [pl.BlockSpec((tm, C), lambda i: (i, 0))] + [_full_spec(a) for a in args[1:]]
    out = pl.pallas_call(
        kern,
        out_shape=jax.ShapeDtypeStruct((M, C), x.dtype),
        grid=(M // tm,),
        in_specs=in_specs,
        out_specs=pl.BlockSpec((tm, C), lambda i: (i, 0)),
        compiler_params=_CP,
    )(*args)
    return out.reshape(B, N, C)


# ------------------- fully fused attention (LN+QKV+rel-pos+softmax+out) -------

def _attn_kernel(x_ref, g_ref, b_ref, wq_ref, wkv_ref, wrel_ref, wout_ref, bout_ref,
                 o_ref, *, heads, dim_head, scale):
    x = x_ref[...].astype(jnp.float32)                 # (N, C)
    N = x.shape[0]
    inner = heads * dim_head
    h = _bf16(_ln(x, g_ref[...], b_ref[...]))
    q = jnp.dot(h, wq_ref[...], preferred_element_type=jnp.float32)    # (N, inner)
    kv = jnp.dot(h, wkv_ref[...], preferred_element_type=jnp.float32)  # (N, 2*inner)
    k = kv[:, :inner]
    v = kv[:, inner:]
    wrel = wrel_ref[...]                                # (2N-1, Dh), pre-flipped, bf16

    ctx_parts = []
    for hd in range(heads):
        sl = slice(hd * dim_head, (hd + 1) * dim_head)
        qh = _bf16(q[:, sl])
        kh = _bf16(k[:, sl])
        vh = _bf16(v[:, sl])
        dots = lax.dot_general(qh, kh, (((1,), (1,)), ((), ())),
                               preferred_element_type=jnp.float32)      # (N, N)
        # Shaw relative positions: qE[i, r] = q_i . wrel[r]; pos[i, j] = qE[i, j - i + N - 1]
        # (wrel is the clipped, lane-flipped embedding window built in the wrapper).
        qe = lax.dot_general(qh, wrel, (((1,), (1,)), ((), ())),
                             preferred_element_type=jnp.float32)        # (N, 2N-1)
        # TODO(synk): for production N, replace the per-row static slices with the
        #             pad+reshape skew (O(1) ops instead of O(N) slices).
        pos_rows = [qe[i:i + 1, N - 1 - i: 2 * N - 1 - i] for i in range(N)]
        pos = jnp.concatenate(pos_rows, axis=0)                          # (N, N)
        logits = (dots + pos) * scale
        m = jnp.max(logits, axis=-1, keepdims=True)
        p = jnp.exp(logits - m)
        denom = jnp.sum(p, axis=-1, keepdims=True)
        p = p * pl.reciprocal(denom, approx=True)       # EUP reciprocal, not VALU divide
        ctx_parts.append(jnp.dot(_bf16(p), vh, preferred_element_type=jnp.float32))

    ctx = jnp.concatenate(ctx_parts, axis=-1)           # (N, inner) f32
    out = jnp.dot(_bf16(ctx), wout_ref[...],
                  preferred_element_type=jnp.float32) + bout_ref[...]   # single out-proj matmul
    o_ref[...] = (x + out).astype(o_ref.dtype)


def attention_block(x, ln_g, ln_b, wq, wkv, rel_emb, wout, bout, *, heads, max_pos_emb):
    B, N, C = x.shape
    inner = wq.shape[1]
    dh = inner // heads
    # Clipped Shaw window of width 2N-1, flipped so pos[i, j] = qE[i, j - i + N - 1] in-kernel.
    rel_idx = jnp.clip(jnp.arange(2 * N - 1) - (N - 1), -max_pos_emb, max_pos_emb) + max_pos_emb
    wrel = rel_emb[rel_idx[::-1]].astype(jnp.bfloat16)                  # (2N-1, Dh)
    args = [x, ln_g.reshape(1, C), ln_b.reshape(1, C), wq, wkv, wrel, wout, bout.reshape(1, C)]
    in_specs = [_batch_spec(N, C)] + [_full_spec(a) for a in args[1:]]
    # TODO(synk): for production N (v7x 64 MiB VMEM), tile KV flash-style instead of full N x N.
    return pl.pallas_call(
        functools.partial(_attn_kernel, heads=heads, dim_head=dh, scale=dh ** -0.5),
        out_shape=jax.ShapeDtypeStruct((B, N, C), x.dtype),
        grid=(B,),
        in_specs=in_specs,
        out_specs=_batch_spec(N, C),
        compiler_params=_CP,
    )(*args)


# ---------------- fused conformer conv module (single kernel, no scratch) -----

def _conv_module_kernel(x_ref, g_ref, b_ref, pw1w_ref, pw1b_ref, dww_ref, dwb_ref,
                        bns_ref, bnsh_ref, pw2w_ref, pw2b_ref, o_ref, *, ksize):
    x = x_ref[...].astype(jnp.float32)                  # (N, C)
    N = x.shape[0]
    pad = (ksize - 1) // 2
    h = _ln(x, g_ref[...], b_ref[...])
    y = jnp.dot(_bf16(h), pw1w_ref[...], preferred_element_type=jnp.float32) + pw1b_ref[...]
    inner = y.shape[-1] // 2
    g = y[:, :inner] * jax.nn.sigmoid(y[:, inner:])     # GLU
    w = dww_ref[...]                                    # (K, inner) f32
    # Depthwise 'same' conv: shift-and-accumulate on the in-register GLU output.
    acc = jnp.zeros((N, inner), jnp.float32) + dwb_ref[...]
    for k in range(ksize):
        d = k - pad
        if d == 0:
            shifted = g
        elif d > 0:
            shifted = jnp.concatenate(
                [g[d:, :], jnp.zeros((d, inner), jnp.float32)], axis=0)
        else:
            shifted = jnp.concatenate(
                [jnp.zeros((-d, inner), jnp.float32), g[:N + d, :]], axis=0)
        acc = acc + shifted * w[k:k + 1, :]
    acc = acc * bns_ref[...] + bnsh_ref[...]            # eval-mode BatchNorm1d (folded)
    acc = acc * jax.nn.sigmoid(acc)                     # Swish
    out = jnp.dot(_bf16(acc), pw2w_ref[...], preferred_element_type=jnp.float32) + pw2b_ref[...]
    o_ref[...] = (x + out).astype(o_ref.dtype)


def conv_module(x, ln_g, ln_b, pw1_w, pw1_b, dw_w, dw_b, bn_scale, bn_shift,
                pw2_w, pw2_b, *, ksize):
    B, N, C = x.shape
    inner2 = pw1_w.shape[1]
    inner = inner2 // 2
    assert ksize % 2 == 1
    args = [x, ln_g.reshape(1, C), ln_b.reshape(1, C), pw1_w, pw1_b.reshape(1, inner2),
            dw_w, dw_b.reshape(1, inner), bn_scale.reshape(1, inner),
            bn_shift.reshape(1, inner), pw2_w, pw2_b.reshape(1, C)]
    in_specs = [_batch_spec(N, C)] + [_full_spec(a) for a in args[1:]]
    return pl.pallas_call(
        functools.partial(_conv_module_kernel, ksize=ksize),
        out_shape=jax.ShapeDtypeStruct((B, N, C), x.dtype),
        grid=(B,),
        in_specs=in_specs,
        out_specs=_batch_spec(N, C),
        compiler_params=_CP,
    )(*args)


# ---------------- boundary 3-tap convs: shifted matmuls in-kernel (no im2col) --

def _conv3_s1_kernel(xp_ref, w_ref, b_ref, o_ref, *, n_out, activation):
    cout = b_ref.shape[-1]
    acc = jnp.zeros((n_out, cout), jnp.float32) + b_ref[...]
    for k in range(3):
        rows = _bf16(xp_ref[k:k + n_out, :])            # contiguous in-VMEM slice
        acc = acc + jnp.dot(rows, w_ref[k], preferred_element_type=jnp.float32)
    if activation == "silu":
        acc = acc * jax.nn.sigmoid(acc)
    o_ref[...] = acc.astype(o_ref.dtype)


def conv3_s1(x, w, b, *, activation="none", out_dtype=None):
    """3-tap, stride-1, pad-1 conv. x: (B, N, Cin) channels-last; w: (3, Cin, Cout)."""
    B, N, Cin = x.shape
    Cout = w.shape[-1]
    out_dtype = out_dtype or x.dtype
    xp = jnp.pad(x, ((0, 0), (1, 1), (0, 0)))           # single padded copy, read once
    b2 = b.reshape(1, Cout)
    return pl.pallas_call(
        functools.partial(_conv3_s1_kernel, n_out=N, activation=activation),
        out_shape=jax.ShapeDtypeStruct((B, N, Cout), out_dtype),
        grid=(B,),
        in_specs=[_batch_spec(N + 2, Cin), _full_spec(w), _full_spec(b2)],
        out_specs=_batch_spec(N, Cout),
        compiler_params=_CP,
    )(xp, w, b2)


def _conv3_s2_kernel(xe_ref, xo_ref, w_ref, b_ref, o_ref, *, n_out):
    cout = b_ref.shape[-1]
    acc = jnp.zeros((n_out, cout), jnp.float32) + b_ref[...]
    acc = acc + jnp.dot(_bf16(xe_ref[0:n_out, :]), w_ref[0], preferred_element_type=jnp.float32)
    acc = acc + jnp.dot(_bf16(xo_ref[0:n_out, :]), w_ref[1], preferred_element_type=jnp.float32)
    acc = acc + jnp.dot(_bf16(xe_ref[1:n_out + 1, :]), w_ref[2], preferred_element_type=jnp.float32)
    o_ref[...] = acc.astype(o_ref.dtype)


def conv3_s2(x, w, b, *, out_dtype=None):
    """3-tap, stride-2, pad-1 conv (down-sampling). Even/odd row split done once in XLA."""
    B, N, Cin = x.shape
    Cout = w.shape[-1]
    n_out = N // 2
    out_dtype = out_dtype or x.dtype
    xp = jnp.pad(x, ((0, 0), (1, 1), (0, 0)))           # (B, N+2, Cin)
    xe = xp[:, 0::2, :]                                 # (B, N/2+1, Cin)
    xo = xp[:, 1::2, :]                                 # (B, N/2+1, Cin)
    b2 = b.reshape(1, Cout)
    return pl.pallas_call(
        functools.partial(_conv3_s2_kernel, n_out=n_out),
        out_shape=jax.ShapeDtypeStruct((B, n_out, Cout), out_dtype),
        grid=(B,),
        in_specs=[_batch_spec(n_out + 1, Cin), _batch_spec(n_out + 1, Cin),
                  _full_spec(w), _full_spec(b2)],
        out_specs=_batch_spec(n_out, Cout),
        compiler_params=_CP,
    )(xe, xo, w, b2)


# ----------------------------- model (glue) -----------------------------------

def conformer_block(x, p, *, heads, conv_kernel, max_pos_emb=512):
    # ff1: x = 0.5 * FF(LN(x)) + x                        (row-tiled fused kernel)
    x = ff_block(x, p["ff1_ln_g"], p["ff1_ln_b"], p["ff1_w1"], p["ff1_b1"],
                 p["ff1_w2"], p["ff1_b2"])
    # attention: x = Attn(LN(x)) + x                      (single fused kernel)
    x = attention_block(x, p["attn_ln_g"], p["attn_ln_b"], p["to_q_w"], p["to_kv_w"],
                        p["rel_pos_emb"], p["to_out_w"], p["to_out_b"],
                        heads=heads, max_pos_emb=max_pos_emb)
    # conformer conv module: x = ConvModule(x) + x        (single fused kernel)
    x = conv_module(x, p["conv_ln_g"], p["conv_ln_b"], p["pw1_w"], p["pw1_b"],
                    p["dw_w"], p["dw_b"], p["bn_scale"], p["bn_shift"],
                    p["pw2_w"], p["pw2_b"], ksize=conv_kernel)
    # ff2 + post-LN: x = LN(0.5 * FF(LN(x)) + x)          (row-tiled fused kernel)
    x = ff_block(x, p["ff2_ln_g"], p["ff2_ln_b"], p["ff2_w1"], p["ff2_b1"],
                 p["ff2_w2"], p["ff2_b2"],
                 post_g=p["post_ln_g"], post_b=p["post_ln_b"])
    return x


def encoder_forward(x, params, mask=None, need_transpose=False):
    """x: (B, C_in, N) like the PyTorch module. Returns (out, mask)."""
    cfg = params["config"]
    if need_transpose:
        x = jnp.transpose(x, (0, 2, 1))                  # b n d -> b d n
    # TODO(synk): masked path (per-block attention mask + max_pool1d mask downsampling)
    #             and train-mode Dropout/BatchNorm are not implemented (eval, mask=None only).
    h = jnp.transpose(x, (0, 2, 1))                      # NCW -> (B, N, C)
    h = conv3_s1(h, params["conv_in_w"], params["conv_in_b"],
                 activation="silu", out_dtype=jnp.bfloat16)
    for stage in params["stages"]:
        h = conformer_block(h, stage["block"], heads=cfg["heads"],
                            conv_kernel=cfg["conv_kernel"],
                            max_pos_emb=cfg["max_pos_emb"])
        h = conv3_s2(h, stage["down_w"], stage["down_b"], out_dtype=jnp.bfloat16)
    h = conv3_s1(h, params["conv_out_w"], params["conv_out_b"], out_dtype=jnp.float32)
    out = jnp.transpose(h, (0, 2, 1))                    # back to NCW
    if need_transpose:
        out = jnp.transpose(out, (0, 2, 1))
    return out, mask


# ----------------------------- parameter init ---------------------------------

def _dense(key, shape, scale=0.05, dtype=jnp.float32):
    return (jax.random.normal(key, shape, jnp.float32) * scale).astype(dtype)


def init_conformer_block(key, dim, heads, conv_expansion, conv_kernel, max_pos_emb=512):
    dim_head = dim // heads
    inner_attn = dim_head * heads
    inner_conv = dim * conv_expansion
    ks = iter(jax.random.split(key, 24))
    ones = jnp.ones((dim,), jnp.float32)
    zeros = jnp.zeros((dim,), jnp.float32)
    bf = jnp.bfloat16
    p = {}
    p["ff1_ln_g"], p["ff1_ln_b"] = ones, zeros
    p["ff1_w1"], p["ff1_b1"] = _dense(next(ks), (dim, 4 * dim), dtype=bf), _dense(next(ks), (4 * dim,))
    p["ff1_w2"], p["ff1_b2"] = _dense(next(ks), (4 * dim, dim), dtype=bf), _dense(next(ks), (dim,))
    p["attn_ln_g"], p["attn_ln_b"] = ones, zeros
    p["to_q_w"] = _dense(next(ks), (dim, inner_attn), dtype=bf)
    p["to_kv_w"] = _dense(next(ks), (dim, 2 * inner_attn), dtype=bf)
    p["to_out_w"] = _dense(next(ks), (inner_attn, dim), dtype=bf)
    p["to_out_b"] = _dense(next(ks), (dim,))
    p["rel_pos_emb"] = _dense(next(ks), (2 * max_pos_emb + 1, dim_head))
    p["conv_ln_g"], p["conv_ln_b"] = ones, zeros
    p["pw1_w"], p["pw1_b"] = _dense(next(ks), (dim, 2 * inner_conv), dtype=bf), _dense(next(ks), (2 * inner_conv,))
    p["dw_w"], p["dw_b"] = _dense(next(ks), (conv_kernel, inner_conv)), _dense(next(ks), (inner_conv,))
    bn_gamma = jnp.ones((inner_conv,), jnp.float32)
    bn_beta = jnp.zeros((inner_conv,), jnp.float32)
    bn_mean = jnp.zeros((inner_conv,), jnp.float32)
    bn_var = jnp.ones((inner_conv,), jnp.float32)
    bn_scale = bn_gamma / jnp.sqrt(bn_var + 1e-5)
    p["bn_scale"], p["bn_shift"] = bn_scale, bn_beta - bn_mean * bn_scale
    p["pw2_w"], p["pw2_b"] = _dense(next(ks), (inner_conv, dim), dtype=bf), _dense(next(ks), (dim,))
    p["ff2_ln_g"], p["ff2_ln_b"] = ones, zeros
    p["ff2_w1"], p["ff2_b1"] = _dense(next(ks), (dim, 4 * dim), dtype=bf), _dense(next(ks), (4 * dim,))
    p["ff2_w2"], p["ff2_b2"] = _dense(next(ks), (4 * dim, dim), dtype=bf), _dense(next(ks), (dim,))
    p["post_ln_g"], p["post_ln_b"] = ones, zeros
    return p


def init_encoder(key, *, input_dim, dim, output_dim, heads, conv_expansion,
                 conv_kernel, n_stages, max_pos_emb=512):
    keys = jax.random.split(key, 4 + 3 * n_stages)
    bf = jnp.bfloat16
    params = {
        "config": {"heads": heads, "conv_kernel": conv_kernel, "max_pos_emb": max_pos_emb},
        "conv_in_w": _dense(keys[0], (3, input_dim, dim), dtype=bf),
        "conv_in_b": _dense(keys[1], (dim,)),
        "conv_out_w": _dense(keys[2], (3, dim, output_dim), dtype=bf),
        "conv_out_b": _dense(keys[3], (output_dim,)),
        "stages": [],
    }
    for s in range(n_stages):
        kb, kw, kbias = keys[4 + 3 * s: 7 + 3 * s]
        params["stages"].append({
            "block": init_conformer_block(kb, dim, heads, conv_expansion, conv_kernel,
                                          max_pos_emb=max_pos_emb),
            "down_w": _dense(kw, (3, dim, dim), dtype=bf),
            "down_b": _dense(kbias, (dim,)),
        })
    return params


# -------------------------- pure-JAX f32 reference -----------------------------

def _f32(a):
    return a.astype(jnp.float32)


def _ref_ln(x, g, b, eps=1e-5):
    mu = x.mean(-1, keepdims=True)
    var = ((x - mu) ** 2).mean(-1, keepdims=True)
    return (x - mu) / jnp.sqrt(var + eps) * g + b


def _ref_ff(x, p, pre):
    h = _ref_ln(x, p[pre + "_ln_g"], p[pre + "_ln_b"])
    h = h @ _f32(p[pre + "_w1"]) + p[pre + "_b1"]
    h = h * jax.nn.sigmoid(h)
    h = h @ _f32(p[pre + "_w2"]) + p[pre + "_b2"]
    return x + 0.5 * h


def _ref_attn(x, p, heads, max_pos_emb):
    B, N, C = x.shape
    h = _ref_ln(x, p["attn_ln_g"], p["attn_ln_b"])
    q = h @ _f32(p["to_q_w"])
    kv = h @ _f32(p["to_kv_w"])
    inner = q.shape[-1]
    dh = inner // heads
    k, v = kv[..., :inner], kv[..., inner:]
    qh = q.reshape(B, N, heads, dh).transpose(0, 2, 1, 3)
    kh = k.reshape(B, N, heads, dh).transpose(0, 2, 1, 3)
    vh = v.reshape(B, N, heads, dh).transpose(0, 2, 1, 3)
    dots = jnp.einsum('bhnd,bhmd->bhnm', qh, kh)
    seq = jnp.arange(N)
    dist = jnp.clip(seq[:, None] - seq[None, :], -max_pos_emb, max_pos_emb) + max_pos_emb
    rel = p["rel_pos_emb"][dist]                        # (N, N, dh)
    pos = jnp.einsum('bhnd,nmd->bhnm', qh, rel)
    attn = jax.nn.softmax((dots + pos) * dh ** -0.5, axis=-1)
    ctx = jnp.einsum('bhnm,bhmd->bhnd', attn, vh)
    ctx = ctx.transpose(0, 2, 1, 3).reshape(B, N, inner)
    return x + ctx @ _f32(p["to_out_w"]) + p["to_out_b"]


def _ref_conv_module(x, p, ksize):
    h = _ref_ln(x, p["conv_ln_g"], p["conv_ln_b"])
    y = h @ _f32(p["pw1_w"]) + p["pw1_b"]
    inner = y.shape[-1] // 2
    g = y[..., :inner] * jax.nn.sigmoid(y[..., inner:])
    pad = (ksize - 1) // 2
    gp = jnp.pad(g, ((0, 0), (pad, pad), (0, 0)))
    acc = jnp.zeros_like(g) + p["dw_b"]
    for k in range(ksize):
        acc = acc + gp[:, k:k + x.shape[1], :] * p["dw_w"][k]
    acc = acc * p["bn_scale"] + p["bn_shift"]
    acc = acc * jax.nn.sigmoid(acc)
    return x + acc @ _f32(p["pw2_w"]) + p["pw2_b"]


def _ref_conv3(x, w, b, *, stride=1, act=False):
    B, N, _ = x.shape
    xp = jnp.pad(x, ((0, 0), (1, 1), (0, 0)))
    n_out = (N + 2 - 3) // stride + 1
    w = _f32(w)
    y = jnp.zeros((B, n_out, w.shape[-1]), jnp.float32) + b
    for k in range(3):
        y = y + jnp.einsum('bnc,cd->bnd',
                           xp[:, k:k + (n_out - 1) * stride + 1:stride, :], w[k])
    if act:
        y = y * jax.nn.sigmoid(y)
    return y


def encoder_reference(x, params):
    cfg = params["config"]
    h = jnp.transpose(x, (0, 2, 1)).astype(jnp.float32)
    h = _ref_conv3(h, params["conv_in_w"], params["conv_in_b"], act=True)
    for st in params["stages"]:
        p = st["block"]
        h = _ref_ff(h, p, "ff1")
        h = _ref_attn(h, p, cfg["heads"], cfg["max_pos_emb"])
        h = _ref_conv_module(h, p, cfg["conv_kernel"])
        h = _ref_ff(h, p, "ff2")
        h = _ref_ln(h, p["post_ln_g"], p["post_ln_b"])
        h = _ref_conv3(h, st["down_w"], st["down_b"], stride=2)
    h = _ref_conv3(h, params["conv_out_w"], params["conv_out_b"])
    return jnp.transpose(h, (0, 2, 1))


# --------------------------------- main ----------------------------------------

if __name__ == "__main__":
    # Small configuration consistent with the module's forward:
    # input_dim=8, dim=16, output_dim=16, heads=2, down_sampling_ratio=4 (2 stages).
    B, N = 2, 16
    input_dim, dim, output_dim = 8, 16, 16
    heads, conv_expansion, conv_kernel = 2, 2, 5
    down_sampling_ratio = 4
    n_stages = 2  # int(log2(down_sampling_ratio))

    key = jax.random.PRNGKey(0)
    kp, kx = jax.random.split(key)
    params = init_encoder(kp, input_dim=input_dim, dim=dim, output_dim=output_dim,
                          heads=heads, conv_expansion=conv_expansion,
                          conv_kernel=conv_kernel, n_stages=n_stages)

    x = jax.random.normal(kx, (B, input_dim, N), jnp.float32)   # PyTorch NCW layout

    out, mask = encoder_forward(x, params, mask=None, need_transpose=False)
    out = jax.block_until_ready(out)

    assert out.shape == (B, output_dim, N // down_sampling_ratio), out.shape
    assert mask is None
    assert bool(jnp.all(jnp.isfinite(out)))

    # Tolerance check against a pure-JAX f32 reference (bf16 activation/weight drift allowed).
    ref = jax.block_until_ready(encoder_reference(x, params))
    err = float(jnp.max(jnp.abs(out.astype(jnp.float32) - ref)))
    assert err < 1e-1, f"max abs err vs reference: {err}"

    print("KERNEL_OK")
</pallas_src>

<mosaic_0001>
module attributes {stable_mosaic.version = 11 : i64} {
  func.func @_conv3_s1_kernel(%arg0: i32, %arg1: memref<1x18x8xf32, #tpu.memory_space<vmem>>, %arg2: memref<3x8x16xbf16, #tpu.memory_space<vmem>>, %arg3: memref<1x16xf32, #tpu.memory_space<vmem>>, %arg4: memref<1x16x16xbf16, #tpu.memory_space<vmem>>) attributes {dimension_semantics = [#tpu.dimension_semantics<parallel>], iteration_bounds = array<i64: 2>, scalar_prefetch = 0 : i64, scratch_operands = 0 : i64, tpu.core_type = #tpu.core_type<tc>, window_params = [{transform_indices = @transform_0, window_bounds = array<i64: 1, 18, 8>}, {pipeline_mode = #tpu.pipeline_mode<synchronous>, transform_indices = @transform_1, window_bounds = array<i64: 3, 8, 16>}, {pipeline_mode = #tpu.pipeline_mode<synchronous>, transform_indices = @transform_2, window_bounds = array<i64: 1, 16>}, {transform_indices = @transform_3, window_bounds = array<i64: 1, 16, 16>}]} {
    %cst = arith.constant 0.000000e+00 : f32
    %0 = vector.broadcast %cst : f32 to vector<16x16xf32>
    %c0 = arith.constant 0 : index
    %c0_0 = arith.constant 0 : index
    %1 = vector.load %arg3[%c0, %c0_0] : memref<1x16xf32, #tpu.memory_space<vmem>>, vector<1x16xf32>
    %2 = vector.broadcast %1 : vector<1x16xf32> to vector<16x16xf32>
    %3 = arith.addf %0, %2 : vector<16x16xf32>
    %c0_1 = arith.constant 0 : index
    %c0_2 = arith.constant 0 : index
    %c0_3 = arith.constant 0 : index
    %4 = vector.load %arg1[%c0_1, %c0_2, %c0_3] : memref<1x18x8xf32, #tpu.memory_space<vmem>>, vector<1x16x8xf32>
    %5 = vector.shape_cast %4 : vector<1x16x8xf32> to vector<16x8xf32>
    %6 = arith.truncf %5 : vector<16x8xf32> to vector<16x8xbf16>
    %c0_4 = arith.constant 0 : index
    %c0_5 = arith.constant 0 : index
    %c0_6 = arith.constant 0 : index
    %7 = vector.load %arg2[%c0_4, %c0_5, %c0_6] : memref<3x8x16xbf16, #tpu.memory_space<vmem>>, vector<1x8x16xbf16>
    %8 = vector.shape_cast %7 : vector<1x8x16xbf16> to vector<8x16xbf16>
    %cst_7 = arith.constant dense<0.000000e+00> : vector<16x16xf32>
    %9 = tpu.matmul %6, %8, %cst_7 {dimension_numbers = #tpu.dot_dimension_numbers<[1], [0], [0], [1], [0, 0, 1, 1], [], []>} : vector<16x8xbf16>, vector<8x16xbf16>, vector<16x16xf32> -> vector<16x16xf32>
    %10 = arith.addf %3, %9 : vector<16x16xf32>
    %c0_8 = arith.constant 0 : index
    %c1 = arith.constant 1 : index
    %c0_9 = arith.constant 0 : index
    %11 = vector.load %arg1[%c0_8, %c1, %c0_9] : memref<1x18x8xf32, #tpu.memory_space<vmem>>, vector<1x16x8xf32>
    %12 = vector.shape_cast %11 : vector<1x16x8xf32> to vector<16x8xf32>
    %13 = arith.truncf %12 : vector<16x8xf32> to vector<16x8xbf16>
    %c1_10 = arith.constant 1 : index
    %c0_11 = arith.constant 0 : index
    %c0_12 = arith.constant 0 : index
    %14 = vector.load %arg2[%c1_10, %c0_11, %c0_12] : memref<3x8x16xbf16, #tpu.memory_space<vmem>>, vector<1x8x16xbf16>
    %15 = vector.shape_cast %14 : vector<1x8x16xbf16> to vector<8x16xbf16>
    %cst_13 = arith.constant dense<0.000000e+00> : vector<16x16xf32>
    %16 = tpu.matmul %13, %15, %cst_13 {dimension_numbers = #tpu.dot_dimension_numbers<[1], [0], [0], [1], [0, 0, 1, 1], [], []>} : vector<16x8xbf16>, vector<8x16xbf16>, vector<16x16xf32> -> vector<16x16xf32>
    %17 = arith.addf %10, %16 : vector<16x16xf32>
    %c0_14 = arith.constant 0 : index
    %c2 = arith.constant 2 : index
    %c0_15 = arith.constant 0 : index
    %18 = vector.load %arg1[%c0_14, %c2, %c0_15] : memref<1x18x8xf32, #tpu.memory_space<vmem>>, vector<1x16x8xf32>
    %19 = vector.shape_cast %18 : vector<1x16x8xf32> to vector<16x8xf32>
    %20 = arith.truncf %19 : vector<16x8xf32> to vector<16x8xbf16>
    %c2_16 = arith.constant 2 : index
    %c0_17 = arith.constant 0 : index
    %c0_18 = arith.constant 0 : index
    %21 = vector.load %arg2[%c2_16, %c0_17, %c0_18] : memref<3x8x16xbf16, #tpu.memory_space<vmem>>, vector<1x8x16xbf16>
    %22 = vector.shape_cast %21 : vector<1x8x16xbf16> to vector<8x16xbf16>
    %cst_19 = arith.constant dense<0.000000e+00> : vector<16x16xf32>
    %23 = tpu.matmul %20, %22, %cst_19 {dimension_numbers = #tpu.dot_dimension_numbers<[1], [0], [0], [1], [0, 0, 1, 1], [], []>} : vector<16x8xbf16>, vector<8x16xbf16>, vector<16x16xf32> -> vector<16x16xf32>
    %24 = arith.addf %17, %23 : vector<16x16xf32>
    %25 = arith.negf %24 : vector<16x16xf32>
    %26 = math.exp %25 : vector<16x16xf32>
    %cst_20 = arith.constant 1.000000e+00 : f32
    %27 = vector.broadcast %cst_20 : f32 to vector<16x16xf32>
    %28 = arith.addf %27, %26 : vector<16x16xf32>
    %29 = arith.divf %27, %28 : vector<16x16xf32>
    %30 = arith.mulf %24, %29 : vector<16x16xf32>
    %31 = arith.truncf %30 : vector<16x16xf32> to vector<16x16xbf16>
    %c0_21 = arith.constant 0 : index
    %c0_22 = arith.constant 0 : index
    %c0_23 = arith.constant 0 : index
    %32 = vector.load %arg4[%c0_21, %c0_22, %c0_23] : memref<1x16x16xbf16, #tpu.memory_space<vmem>>, vector<1x16x16xbf16>
    %33 = vector.shape_cast %32 : vector<1x16x16xbf16> to vector<16x16xbf16>
    %34 = vector.shape_cast %31 : vector<16x16xbf16> to vector<1x16x16xbf16>
    tpu.vector_store %arg4[%c0_21, %c0_22, %c0_23], %34 {strides = array<i32>} : memref<1x16x16xbf16, #tpu.memory_space<vmem>>, vector<1x16x16xbf16>,
    return
  }
  func.func @transform_0(%arg0: i32) -> (i32, i32, i32) {
    %c0_i32 = arith.constant 0 : i32
    %c0_i32_0 = arith.constant 0 : i32
    %c0_i32_1 = arith.constant 0 : i32
    return %arg0, %c0_i32, %c0_i32_0 : i32, i32, i32
  }
  func.func @transform_1(%arg0: i32) -> (i32, i32, i32) {
    %c0_i32 = arith.constant 0 : i32
    %c0_i32_0 = arith.constant 0 : i32
    %c0_i32_1 = arith.constant 0 : i32
    %c0_i32_2 = arith.constant 0 : i32
    return %c0_i32, %c0_i32_0, %c0_i32_1 : i32, i32, i32
  }
  func.func @transform_2(%arg0: i32) -> (i32, i32) {
    %c0_i32 = arith.constant 0 : i32
    %c0_i32_0 = arith.constant 0 : i32
    %c0_i32_1 = arith.constant 0 : i32
    return %c0_i32, %c0_i32_0 : i32, i32
  }
  func.func @transform_3(%arg0: i32) -> (i32, i32, i32) {
    %c0_i32 = arith.constant 0 : i32
    %c0_i32_0 = arith.constant 0 : i32
    %c0_i32_1 = arith.constant 0 : i32
    return %arg0, %c0_i32, %c0_i32_0 : i32, i32, i32
  }
}

</mosaic_0001>

<bundles_post_ra>
// kernel: tpu_custom_call.1
= control target key start
LH: loop header
LB: loop body
LE: loop exit
PB: predicated region body
PF: predicated region fallthrough
CT: control target
= control target key end

     0   :  { %8 = vsyncpa [#allocation3], 0  ;;  %s749_s0 = inlined_call_operand.vmem [shape: f32[2,18,8], index: 0, kind: input, shape index: {}]   ;;  %s750_s1 = inlined_call_operand.vmem [shape: bf16[3,8,16], index: 1, kind: input, shape index: {}]   ;;  %s751_s2 = inlined_call_operand.vmem [shape: f32[1,16], index: 2, kind: input, shape index: {}]   ;;  %s752_s3 = inlined_call_operand.hbm [shape: bf16[2,16,16], index: 3, kind: output, shape index: {}]  }
   0x1   :  { %10 = vsyncpa [#allocation3 + $0x1], 0  ;;  %s629_s12 = smov 0   ;;  %s631_s13 = smov 0  }
   0x2   :  { %s633_s14 = smov 0   ;;  %s635_s15 = smov 0  }
   0x3 LB: > { %s650_s16 = sadd.s32 4294967295, %s602_s15   ;;  %s442_s17 = sadd.s32 4294967294, %s602_s15   ;;  %s602_s15 = sphi %s635_s15, %s758_s15   ;;  %s598_s14 = sphi %s633_s14, %s757_s14   ;;  %s594_s13 = sphi %s631_s13, %s756_s13   ;;  %s590_s12 = sphi %s629_s12, %s755_s12  }
   0x4   : > { %s654_s18 = sadd.s32 1, %s602_s15   ;;  %s91_s19 = sadd.s32 1, %s598_s14 }
   0x5   : > { %s88_s20 = ssub.s32 %s602_s15, %s654_s18  ;;  %p101_p0 = scmp.ne.s32.totalorder %s598_s14, %s594_s13 }
   0x6   : > { %p89_p1 = scmp.eq.s32.totalorder %s88_s20, 0  ;;  %p102_p2 = scmp.eq.s32.totalorder %s650_s16, 1 }
   0x7   : > { %p107_p3 = scmp.ne.s32.totalorder %s594_s13, %s590_s12  ;;  %p108_p4 = scmp.eq.s32.totalorder %s442_s17, 1 }
   0x8   : > { %s665_s21 = scalar_select %p89_p1, %s598_s14, %s91_s19  }
   0x9   : > { %p667_p5 = por %p102_p2, %p101_p0  ;;  %p671_p6 = por %p108_p4, %p107_p3 }
   0xa   : > { %p445_p7 = scmp.ge.s32.totalorder %s602_s15, 1  ;;  %p140_p8 = scmp.lt.s32.totalorder %s602_s15, 3 }
   0xc   : > { %p141_p9 = pnand %p445_p7, %p140_p8 }
   0xd   : > { %p164_p10 = scmp.lt.s32.totalorder (!%p141_p9), %s650_s16, 1  ;;  %s161_s10 = sand.u32 (!%p141_p9), 1, %s594_s13  }
   0xe   : > { %144 = sbr.rel (%p141_p9) target bundleno = 285 (0x11d), region = 32  ;;  %s446_s11 = sshll.u32 (!%p141_p9), %s161_s10, 3 }
   0xf   : > { %s465_s17 = sshll.u32 (!%p141_p9), %s650_s16, 7  ;;  %s163_s19 = scalar_lea.vmem (!%p141_p9), [#allocation2], %s446_s11 }
  0x10   : > { %s380_s20 = sshll.u32 (!%p141_p9), %s163_s19, 4  ;;  %s705_s26 = scalar_lea.hbm (!%p141_p9), %s752_s3, %s465_s17  ;;  %s707_s20 = int_to_ptr.vmem [resolvable:$true] %s380_s20 }
  0x11   : > { %s709_s27 = scalar_lea.sflag (!%p141_p9), [#allocation3], %s161_s10 }
  0x13   : > { %v181_v0 = vld [vmem:[%s750_s1] sm:$0xf]  ;;  %vm186_vm0 = vcmask 1043456   ;;  %v450_v1 = vld [vmem:[%s750_s1 + $0x4] sm:$0xf]  ;;  %v604_v2 = vmov 0.0  }
  0x14   : > { %472 = vmatprep.subr.bf16.mxu0 %v604_v2  ;;  %v188_v3 = vsel %vm186_vm0, %v181_v0, 0  ;;  %478 = vmatprep.subr.bf16.mxu1 %v604_v2  ;;  %v242_v4 = vsel %vm186_vm0, %v450_v1, 0  ;;  %vm605_vm1 = vmmov 0   ;;  %s165_s28 = scalar_select %p164_p10, %s650_s16, 1  ;;  %v452_v5 = vld [vmem:[%s750_s1 + $0x8] sm:$0xf] }
  0x15   : > { %473 = vmatpush3.bf16.msra.mxu0 %v188_v3  ;;  %479 = vmatpush3.bf16.msra.mxu1 %v242_v4  ;;  %vm182_vm2 = vcmask 64512   ;;  %v296_v11 = vsel %vm186_vm0, %v452_v5, 0  ;;  %v448_v16 = vld [vmem:[%s751_s2] ss:$0 sm:$0xff]  ;;  %vm363_vm3 = vcmask 125952   ;;  %s542_s16 = scalar_lea.vmem %s707_s20, 128 }
  0x16   : > { %474 = vmatprep.mubr.msk.bf16.mxu0 %vm605_vm1, %v604_v2  ;;  %480 = vmatprep.mubr.msk.bf16.mxu1 %vm605_vm1, %v604_v2  ;;  %s490_s29 = smul.u32 24, %s165_s28  ;;  %p543_p11 = scmp.ne.s32.totalorder %s707_s20, %s542_s16 }
  0x17   : > { %484 = vmatprep.subr.bf16.mxu0 %v604_v2  ;;  %s606_s28 = smov [#allocation2]  }
  0x18   : > { %s168_s7 = scalar_lea.vmem %s749_s0, %s490_s29  ;;  %p544_p12 = pnand %p543_p11, %p667_p5 }
  0x19   : > { %v178_v6 = vld [vmem:[%s168_s7] sm:$0xff]  ;;  %v179_v7 = vld [vmem:[%s168_s7 + $0x8] sm:$0xff]  ;;  %s546_s29 = sshll.u32 %s606_s28, 4  ;;  %s547_s29 = int_to_ptr.vmem [resolvable:$false] %s546_s29 }
  0x1a   : > { %v233_v8 = vld [vmem:[%s168_s7 + $0x1] sm:$0xff]  ;;  %v180_v9 = vpack.c.bf16 %v179_v7, %v178_v6  ;;  %v234_v10 = vld [vmem:[%s168_s7 + $0x9] sm:$0xff]  ;;  %p545_p13 = pneg %p544_p12  ;;  %s548_s30 = scalar_lea.vmem %s547_s29, 256 }
  0x1b   : > { %v235_v12 = vpack.c.bf16 %v234_v10, %v233_v8  ;;  %v287_v13 = vld [vmem:[%s168_s7 + $0x2] sm:$0xff]  ;;  %v288_v14 = vld [vmem:[%s168_s7 + $0xa] sm:$0xff]  ;;  %p549_p0 = scmp.lt.s32.totalorder %s707_s20, %s547_s29  ;;  %p550_p1 = scmp.lt.s32.totalorder %s548_s30, %s542_s16 }
  0x1c   : > { %475 = vmatmul.mubr.msk.bf16.vlgmr.msra.gmra.mxu0 %vm182_vm2, %v180_v9  ;;  %v289_v15 = vpack.c.bf16 %v288_v14, %v287_v13 }
  0x1d   : > { %481 = vmatmul.mubr.msk.bf16.vlgmr.msra.gmra.mxu1 %vm182_vm2, %v235_v12  ;;  %485 = vmatpush3.bf16.msra.mxu0 %v296_v11  ;;  %p551_p2 = por %p550_p1, %p549_p0 }
  0x1e   : > { %486 = vmatprep.mubr.msk.bf16.mxu0 %vm605_vm1, %v604_v2 }
  0x1f   : > { %p552_p3 = pnand %p551_p2, %p545_p13 }
  0x24   : > { %487 = vmatmul.mubr.msk.bf16.vlgmr.msra.gmra.mxu0 %vm182_vm2, %v289_v15 }
  0xdc   : > { %v224_v17 = vpop.f32.mrf.mxu0 }
  0xdd   : > { %v278_v18 = vpop.f32.mrf.mxu1  ;;  %v231_v20 = vadd.f32 %v448_v16, %v224_v17 }
  0xde   : > { %v476_v19 = vpop.f32.mrf.mxu0 }
  0xdf   : > { %v482_v21 = vpop.f32.mrf.mxu1  ;;  %v285_v25 = vadd.f32 %v278_v18, %v231_v20 }
  0xe0   : > { %v227_v22 = vpop.f32.mrf.mxu0 }
  0xe1   : > { %v281_v23 = vpop.f32.mrf.mxu1  ;;  %v232_v26 = vadd.f32 %v448_v16, %v227_v22 }
  0xe2   : > { %v477_v24 = vpop.f32.mrf.mxu0 }
  0xe3   : > { %v483_v27 = vpop.f32.mrf.mxu1  ;;  %v286_v31 = vadd.f32 %v281_v23, %v232_v26 }
  0xe4   : > { %v332_v28 = vpop.f32.mrf.mxu0 }
  0xe5   : > { %v339_v29 = vadd.f32 %v332_v28, %v285_v25 }
  0xe6   : > { %v488_v30 = vpop.f32.mrf.mxu0 }
  0xe7   : > { %v454_v32 = vmul.f32 -1.442695, %v339_v29 }
  0xe8   : > { %v335_v33 = vpop.f32.mrf.mxu0 }
  0xe9   : > { %534 = vpow2.f32 %v454_v32  ;;  %v340_v34 = vadd.f32 %v335_v33, %v286_v31 }
  0xea   : > { %v489_v35 = vpop.f32.mrf.mxu0 }
  0xeb   : > { %v455_v36 = vmul.f32 -1.442695, %v340_v34 }
  0xed   : > { %536 = vpow2.f32 %v455_v36 }
  0xf6   : > { %v535_v37 = vpop.eup %534 }
  0xf7   : > { %v347_v38 = vadd.f32 1.0, %v535_v37 }
  0xf9   : > { %538 = vrcp.f32 %v347_v38 }
  0xfa   : > { %v537_v39 = vpop.eup %536 }
  0xfb   : > { %v348_v40 = vadd.f32 1.0, %v537_v39 }
  0xfd   : > { %540 = vrcp.f32 %v348_v40 }
 0x106   : > { %v539_v41 = vpop.eup %538 }
 0x107   : > { %v353_v42 = vmul.f32 %v539_v41, %v339_v29 }
 0x109   : > { %v463_v43 = vpack.c.bf16 %v353_v42, %v353_v42 }
 0x10a   : > { %v541_v44 = vpop.eup %540 }
 0x10b   : > { %364 = vst.msk [vmem:[%s163_s19] sm:$0xf] %vm363_vm3, %v463_v43  ;;  %v354_v45 = vmul.f32 %v541_v44, %v340_v34 }
 0x10d   : > { %v464_v46 = vpack.c.bf16 %v354_v45, %v354_v45 }
 0x10f   : > { %365 = vst.msk [vmem:[%s163_s19 + $0x4] sm:$0xf] %vm363_vm3, %v464_v46 }
 0x110   : > { %555 = shalt.err (!%p552_p3)
}
 0x111   : > { %s556_s4 = scalar_lea.hbm %s705_s26, 128  ;;  %s560_s7 = scalar_lea.hbm %s752_s3, 256 }
 0x112   : > { %p557_p4 = scmp.ne.s32.totalorder %s705_s26, %s556_s4  ;;  %p561_p9 = scmp.lt.s32.totalorder %s705_s26, %s752_s3 }
 0x113   : > { %p562_p10 = scmp.lt.s32.totalorder %s560_s7, %s556_s4 }
 0x114   : > { %p558_p7 = pnand %p557_p4, %p667_p5 }
 0x115   : > { %p563_p11 = por %p562_p10, %p561_p9 }
 0x116   : > { %p559_p8 = pneg %p558_p7 }
 0x118   : > { %p564_p12 = pnand %p563_p11, %p559_p8 }
 0x11a   : > { %567 = shalt.err (!%p564_p12)
}
 0x11b   : > { %s607_s10 = smov 64   ;;  %s608_s11 = smov 4  }
 0x11c   : > { %491 = dma.vmem_to_hbm [thread:$0]  (%p667_p5), %s707_s20, 128, %s705_s26, %s709_s27, %s607_s10, %s607_s10, %s608_s11  }
 0x11d PF: > { %p497_p13 = scmp.ge.s32.totalorder %s602_s15, 2  ;;  %s395_s17 = sand.u32 1, %s590_s12  }
 0x11e   : > { %s396_s19 = scalar_lea.sflag [#allocation3], %s395_s17 }
 0x11f   : > { %p494_p0 = pnand %p497_p13, %p671_p6 }
 0x121   : > { %p495_p1 = pneg %p494_p0 }
 0x123   : > { %585 = dma.done.wait (%p495_p1), %s396_s19, 128  }
 0x124   : > { %587 = vsyncadd (%p495_p1), %s396_s19, 4294967168  ;;  %p13_p2 = scmp.ge.s32.totalorder %s654_s18, 4   ;;  %s755_s12 = smov %s594_s13 }
 0x125   : > { %s756_s13 = smov %s598_s14  ;;  %s757_s14 = smov %s665_s21 }
 0x126   : > { %s758_s15 = smov %s654_s18  ;;  %15 = sbr.rel (!%p13_p2) target bundleno = 3 (0x3), region = 69 }
 0x12b   :  { %401 = vsyncpa [#allocation3], 1 }
 0x12c   :  { %403 = vsyncpa [#allocation3 + $0x1], 1 }

</bundles_post_ra>
